<compile_context>
chip_gen: v7x
topology: tpu7x:2x2x1
jax: 0.10.0
libtpu: 0.0.40
codegen_flags: <defaults>
</compile_context>

<pallas_src>
import functools

import jax
import jax.numpy as jnp
from jax import lax
from jax.experimental import pallas as pl
from jax.experimental.pallas import tpu as pltpu


def _linear_kernel(x_ref, w_ref, b_ref, o_ref, *, compute_dtype):
    """One (tm, tn) output tile of y = x @ w.T + b, accumulated in o_ref.

    x_ref: (tm, tk)   w_ref: (tn, tk)  (PyTorch (out, in) layout)
    b_ref: (1, tn)    o_ref: (tm, tn)  f32, k-invariant -> VMEM resident.
    K is the innermost grid axis; accumulate across it, add bias at the end.
    """
    k = pl.program_id(2)

    @pl.when(k == 0)
    def _init():
        o_ref[...] = jnp.zeros_like(o_ref)

    x = x_ref[...]
    w = w_ref[...]
    if jnp.dtype(compute_dtype) != jnp.dtype(jnp.float32):
        x = x.astype(compute_dtype)
        w = w.astype(compute_dtype)

    # Contract x's dim 1 with w's dim 1 (x @ w.T) directly on the MXU.
    # TODO(synk): if an MLIR dump (pl.lower_as_mlir) ever shows a per-tile XLU
    # transpose of the weight tile inside the K loop, pre-transpose the weight
    # ONCE at parameter-load time and switch to a ((1,), (0,)) contraction.
    o_ref[...] += lax.dot_general(
        x, w,
        dimension_numbers=(((1,), (1,)), ((), ())),
        preferred_element_type=jnp.float32)

    @pl.when(k == pl.num_programs(2) - 1)
    def _finalize():
        o_ref[...] += b_ref[...]


def _vmem_capacity_bytes():
    """Physical VMEM per core; conservative (v7x) fallback if unqueryable."""
    try:
        info = pltpu.get_tpu_info()
        cap = getattr(info, "vmem_capacity_bytes", None)
        if cap:
            return int(cap)
    except Exception:
        pass
    return 64 * 1024 * 1024


def _pick_tiles(B, L, itemsize, vmem_budget):
    """MXU-aligned tiles sized against the VMEM budget.

    Last-two block dims must be multiples of (8, 128) or the full extent, so
    candidates are 128-multiples (biased large / toward 256-multiples for the
    v6e/v7x 2x256^2 MXU) with the full dim as the legal fallback for tiny
    problems.
    """
    def divisor_tile(dim, candidates):
        for c in candidates:
            if c <= dim and dim % c == 0:
                return c
        return dim  # full extent is always layout-legal

    tm = divisor_tile(B, (512, 256, 128, 64, 32, 16, 8))
    tn = divisor_tile(L, (1024, 512, 256, 128))
    tk = divisor_tile(L, (1024, 512, 256, 128))

    def footprint(tm_, tn_, tk_):
        # 2-deep buffered streamed inputs + resident output block + bias.
        return itemsize * (2 * (tm_ * tk_ + tn_ * tk_ + tn_) + tm_ * tn_)

    def shrink(t, dim, floor):
        h = t // 2
        if h >= floor and h % floor == 0 and dim % h == 0:
            return h
        return t

    # Guard the full-dim fallback: shrink (reduction first) until we fit.
    while footprint(tm, tn, tk) > vmem_budget:
        ntk = shrink(tk, L, 128)
        if ntk != tk:
            tk = ntk
            continue
        ntn = shrink(tn, L, 128)
        if ntn != tn:
            tn = ntn
            continue
        ntm = shrink(tm, B, 8)
        if ntm != tm:
            tm = ntm
            continue
        break  # nothing more can legally shrink; rely on raised vmem limit

    # v7x megacore: make sure the "parallel" (i, j) grid has >= 2 tiles when
    # legally possible so both TensorCores get work (no effect on v5e/v6e).
    if (B // tm) * (L // tn) == 1:
        if tm >= 16 and tm % 16 == 0:
            tm //= 2
        elif tn >= 256 and tn % 256 == 0:
            tn //= 2

    return tm, tn, tk


def matrix_scaling_forward(logits, weight, bias, *, tm=None, tn=None, tk=None,
                           compute_dtype=jnp.float32):
    """y = logits @ weight.T + bias  (PyTorch nn.Linear semantics).

    logits: (B, L) float32
    weight: (L, L) float32  (out_features, in_features) — PyTorch convention
    bias:   (L,)   float32

    Accumulates directly into the (f32) output block, so the output dtype
    doubles as the accumulator dtype.
    """
    B, L = logits.shape
    assert weight.shape == (L, L)
    assert bias.shape == (L,)

    itemsize = jnp.dtype(logits.dtype).itemsize
    vmem_cap = _vmem_capacity_bytes()
    atm, atn, atk = _pick_tiles(B, L, itemsize, int(vmem_cap * 0.6))
    tm = tm or atm
    tn = tn or atn
    tk = tk or atk
    # Floor-division grid would silently drop remainders; fail loudly instead.
    assert B % tm == 0 and L % tn == 0 and L % tk == 0, (
        "tile sizes must divide the problem dims (no remainder masking)")

    b2 = bias.reshape(1, L)  # 2-D so the lane axis is last
    gm, gn, gk = B // tm, L // tn, L // tk

    cost = pl.CostEstimate(
        flops=2 * B * L * L,
        transcendentals=0,
        bytes_accessed=itemsize * (gn * B * L      # x, refetched per j tile
                                   + gm * L * L    # w, refetched per i tile
                                   + gm * gn * L   # bias
                                   + B * L),       # output write
    )

    kernel = functools.partial(_linear_kernel, compute_dtype=compute_dtype)

    return pl.pallas_call(
        kernel,
        out_shape=jax.ShapeDtypeStruct((B, L), logits.dtype),
        grid_spec=pltpu.PrefetchScalarGridSpec(
            num_scalar_prefetch=0,
            grid=(gm, gn, gk),
            in_specs=[
                pl.BlockSpec((tm, tk), lambda i, j, k: (i, k)),   # x
                pl.BlockSpec((tn, tk), lambda i, j, k: (j, k)),   # w (out, in)
                pl.BlockSpec((1, tn), lambda i, j, k: (0, j)),    # bias
            ],
            out_specs=pl.BlockSpec((tm, tn), lambda i, j, k: (i, j)),
        ),
        compiler_params=pltpu.CompilerParams(
            dimension_semantics=("parallel", "parallel", "arbitrary"),
            vmem_limit_bytes=int(vmem_cap * 0.75)),
        cost_estimate=cost,
    )(logits, weight, b2)


if __name__ == "__main__":
    # --- Module-spec shape (logits_len = 32, batch = 8) ---
    B, L = 8, 32
    key = jax.random.PRNGKey(0)
    k_x, k_w, k_b = jax.random.split(key, 3)

    # Mimic nn.Linear init: U(-1/sqrt(in), 1/sqrt(in))
    bound = 1.0 / jnp.sqrt(jnp.float32(L))
    weight = jax.random.uniform(k_w, (L, L), jnp.float32, -bound, bound)
    bias = jax.random.uniform(k_b, (L,), jnp.float32, -bound, bound)
    logits = jax.random.normal(k_x, (B, L), jnp.float32)

    out = jax.block_until_ready(matrix_scaling_forward(logits, weight, bias))
    ref = logits @ weight.T + bias
    assert out.shape == (B, L)
    assert jnp.allclose(out, ref, atol=1e-5, rtol=1e-5)

    # --- Larger shape: exercises the tiled (M, N, K) grid, K accumulation
    #     into the resident output block, and the bias finalize branch ---
    B2, L2 = 128, 2048
    k_x2, k_w2, k_b2 = jax.random.split(jax.random.PRNGKey(1), 3)
    w2 = jax.random.uniform(k_w2, (L2, L2), jnp.float32, -0.02, 0.02)
    b2 = jax.random.uniform(k_b2, (L2,), jnp.float32, -0.02, 0.02)
    x2 = jax.random.normal(k_x2, (B2, L2), jnp.float32)

    out2 = jax.block_until_ready(matrix_scaling_forward(x2, w2, b2))
    ref2 = x2 @ w2.T + b2
    assert jnp.allclose(out2, ref2, atol=1e-3, rtol=1e-3)

    print("KERNEL_OK")
</pallas_src>

<mosaic_0001>
module attributes {stable_mosaic.version = 11 : i64} {
  func.func @_linear_kernel(%arg0: i32, %arg1: i32, %arg2: i32, %arg3: memref<8x32xf32, #tpu.memory_space<vmem>>, %arg4: memref<32x32xf32, #tpu.memory_space<vmem>>, %arg5: memref<1x32xf32, #tpu.memory_space<vmem>>, %arg6: memref<8x32xf32, #tpu.memory_space<vmem>>) attributes {dimension_semantics = [#tpu.dimension_semantics<parallel>, #tpu.dimension_semantics<parallel>, #tpu.dimension_semantics<arbitrary>], iteration_bounds = array<i64: 1, 1, 1>, scalar_prefetch = 0 : i64, scratch_operands = 0 : i64, tpu.core_type = #tpu.core_type<tc>, window_params = [{transform_indices = @transform_0, window_bounds = array<i64: 8, 32>}, {transform_indices = @transform_1, window_bounds = array<i64: 32, 32>}, {transform_indices = @transform_2, window_bounds = array<i64: 1, 32>}, {transform_indices = @transform_3, window_bounds = array<i64: 8, 32>}]} {
    %c0_i32 = arith.constant 0 : i32
    %0 = arith.cmpi eq, %arg2, %c0_i32 : i32
    %1 = arith.extui %0 : i1 to i32
    %c0_i32_0 = arith.constant 0 : i32
    %2 = arith.cmpi ne, %1, %c0_i32_0 : i32
    scf.if %2 {
      %cst_10 = arith.constant 0.000000e+00 : f32
      %12 = vector.broadcast %cst_10 : f32 to vector<8x32xf32>
      %c0_11 = arith.constant 0 : index
      %c0_12 = arith.constant 0 : index
      %13 = vector.load %arg6[%c0_11, %c0_12] : memref<8x32xf32, #tpu.memory_space<vmem>>, vector<8x32xf32>
      tpu.vector_store %arg6[%c0_11, %c0_12], %12 {strides = array<i32>} : memref<8x32xf32, #tpu.memory_space<vmem>>, vector<8x32xf32>,
    } else {
    }
    %c0 = arith.constant 0 : index
    %c0_1 = arith.constant 0 : index
    %3 = vector.load %arg3[%c0, %c0_1] : memref<8x32xf32, #tpu.memory_space<vmem>>, vector<8x32xf32>
    %c0_2 = arith.constant 0 : index
    %c0_3 = arith.constant 0 : index
    %4 = vector.load %arg4[%c0_2, %c0_3] : memref<32x32xf32, #tpu.memory_space<vmem>>, vector<32x32xf32>
    %c0_4 = arith.constant 0 : index
    %c0_5 = arith.constant 0 : index
    %5 = vector.load %arg6[%c0_4, %c0_5] : memref<8x32xf32, #tpu.memory_space<vmem>>, vector<8x32xf32>
    %cst = arith.constant dense<0.000000e+00> : vector<8x32xf32>
    %6 = tpu.matmul %3, %4, %cst {dimension_numbers = #tpu.dot_dimension_numbers<[1], [1], [0], [0], [0, 0, 1, 0], [], []>} : vector<8x32xf32>, vector<32x32xf32>, vector<8x32xf32> -> vector<8x32xf32>
    %7 = arith.addf %5, %6 : vector<8x32xf32>
    %c0_6 = arith.constant 0 : index
    %c0_7 = arith.constant 0 : index
    %8 = vector.load %arg6[%c0_6, %c0_7] : memref<8x32xf32, #tpu.memory_space<vmem>>, vector<8x32xf32>
    tpu.vector_store %arg6[%c0_6, %c0_7], %7 {strides = array<i32>} : memref<8x32xf32, #tpu.memory_space<vmem>>, vector<8x32xf32>,
    %c0_i32_8 = arith.constant 0 : i32
    %9 = arith.cmpi eq, %arg2, %c0_i32_8 : i32
    %10 = arith.extui %9 : i1 to i32
    %c0_i32_9 = arith.constant 0 : i32
    %11 = arith.cmpi ne, %10, %c0_i32_9 : i32
    scf.if %11 {
      %c0_10 = arith.constant 0 : index
      %c0_11 = arith.constant 0 : index
      %12 = vector.load %arg6[%c0_10, %c0_11] : memref<8x32xf32, #tpu.memory_space<vmem>>, vector<8x32xf32>
      %c0_12 = arith.constant 0 : index
      %c0_13 = arith.constant 0 : index
      %13 = vector.load %arg5[%c0_12, %c0_13] : memref<1x32xf32, #tpu.memory_space<vmem>>, vector<1x32xf32>
      %14 = vector.broadcast %13 : vector<1x32xf32> to vector<8x32xf32>
      %15 = arith.addf %12, %14 : vector<8x32xf32>
      %c0_14 = arith.constant 0 : index
      %c0_15 = arith.constant 0 : index
      %16 = vector.load %arg6[%c0_14, %c0_15] : memref<8x32xf32, #tpu.memory_space<vmem>>, vector<8x32xf32>
      tpu.vector_store %arg6[%c0_14, %c0_15], %15 {strides = array<i32>} : memref<8x32xf32, #tpu.memory_space<vmem>>, vector<8x32xf32>,
    } else {
    }
    return
  }
  func.func @transform_0(%arg0: i32, %arg1: i32, %arg2: i32) -> (i32, i32) {
    %c0_i32 = arith.constant 0 : i32
    return %arg0, %arg2 : i32, i32
  }
  func.func @transform_1(%arg0: i32, %arg1: i32, %arg2: i32) -> (i32, i32) {
    %c0_i32 = arith.constant 0 : i32
    return %arg1, %arg2 : i32, i32
  }
  func.func @transform_2(%arg0: i32, %arg1: i32, %arg2: i32) -> (i32, i32) {
    %c0_i32 = arith.constant 0 : i32
    %c0_i32_0 = arith.constant 0 : i32
    return %c0_i32, %arg1 : i32, i32
  }
  func.func @transform_3(%arg0: i32, %arg1: i32, %arg2: i32) -> (i32, i32) {
    %c0_i32 = arith.constant 0 : i32
    return %arg0, %arg1 : i32, i32
  }
}

</mosaic_0001>

<bundles_post_ra>
// kernel: tpu_custom_call.1
= control target key start
LH: loop header
LB: loop body
LE: loop exit
PB: predicated region body
PF: predicated region fallthrough
CT: control target
= control target key end

     0   :  { %8 = vsyncpa [#allocation3], 0  ;;  %s360_s0 = inlined_call_operand.hbm [shape: f32[8,32], index: 0, kind: input, shape index: {}]   ;;  %s361_s1 = inlined_call_operand.hbm [shape: f32[32,32], index: 1, kind: input, shape index: {}]   ;;  %s362_s2 = inlined_call_operand.vmem [shape: f32[1,32], index: 2, kind: input, shape index: {}]   ;;  %s363_s3 = inlined_call_operand.hbm [shape: f32[8,32], index: 3, kind: output, shape index: {}]  }
   0x1   :  { %9 = vsyncpa [#allocation6], 0 }
   0x2   :  { %10 = vsyncpa [#allocation4], 0  ;;  %s280_s12 = smov [#allocation2]   ;;  %s281_s14 = smov [#allocation5]  }
   0x3   :  { %s17_s13 = sshll.u32 %s280_s12, 4  ;;  %s26_s15 = sshll.u32 %s281_s14, 4  ;;  %s18_s13 = int_to_ptr.vmem [resolvable:$true] %s17_s13  ;;  %s308_s15 = int_to_ptr.vmem [resolvable:$true] %s26_s15 }
   0x4   :  { %s208_s18 = scalar_lea.hbm %s360_s0, 128 }
   0x5   :  { %p209_p0 = scmp.ne.s32.totalorder %s360_s0, %s208_s18  ;;  %p212_p1 = scmp.lt.u32.totalorder %s208_s18, %s360_s0 }
   0x7   :  { %p214_p2 = pnand %p212_p1, %p209_p0 }
   0x9   :  { %217 = shalt.err (!%p214_p2)
}
   0xa   :  { %s218_s23 = scalar_lea.vmem %s18_s13, 128  ;;  %p223_p4 = scmp.lt.s32.totalorder %s18_s13, %s18_s13 }
   0xb   :  { %p219_p3 = scmp.ne.s32.totalorder %s18_s13, %s218_s23  ;;  %p224_p5 = scmp.lt.s32.totalorder %s218_s23, %s218_s23 }
   0xd   :  { %p225_p6 = por %p224_p5, %p223_p4 }
   0xf   :  { %p226_p7 = pnand %p225_p6, %p219_p3 }
  0x11   :  { %229 = shalt.err (!%p226_p7)
}
  0x12   :  { %20 = dma.hbm_to_vmem [thread:$0]  %s360_s0, 128, %s18_s13, [#allocation3]  }
  0x13   :  { %s230_s28 = scalar_lea.hbm %s361_s1, 512 }
  0x14   :  { %p231_p8 = scmp.ne.s32.totalorder %s361_s1, %s230_s28  ;;  %p234_p9 = scmp.lt.u32.totalorder %s230_s28, %s361_s1 }
  0x16   :  { %p236_p10 = pnand %p234_p9, %p231_p8 }
  0x18   :  { %239 = shalt.err (!%p236_p10)
}
  0x19   :  { %s240_s6 = scalar_lea.vmem %s308_s15, 512  ;;  %p245_p12 = scmp.lt.s32.totalorder %s308_s15, %s308_s15 }
  0x1a   :  { %p241_p11 = scmp.ne.s32.totalorder %s308_s15, %s240_s6  ;;  %p246_p13 = scmp.lt.s32.totalorder %s240_s6, %s240_s6 }
  0x1c   :  { %p247_p0 = por %p246_p13, %p245_p12 }
  0x1e   :  { %p248_p1 = pnand %p247_p0, %p241_p11 }
  0x20   :  { %251 = shalt.err (!%p248_p1)
}
  0x21   :  { %s282_s0 = smov 128   ;;  %s283_s7 = smov 8  }
  0x22   :  { %32 = dma.hbm_to_vmem [thread:$0]  %s361_s1, 512, %s308_s15, [#allocation6], %s282_s0, %s282_s0, %s283_s7  }
  0x23   :  { %274 = dma.done.wait [#allocation3], 128  }
  0x24   :  { %275 = vsyncadd [#allocation3], 4294967168 }
  0x25   :  { %276 = dma.done.wait [#allocation6], 512  }
  0x26   :  { %277 = vsyncadd [#allocation6], 4294966784  ;;  %vm45_vm0 = vcmask 261120   ;;  %v284_v0 = vmov 0.0|0.0   ;;  %v285_v1 = vmov 0.0   ;;  %vm286_vm1 = vmmov 0  }
  0x27   :  { %192 = vmatprep.subr.bf16.mxu0 %v284_v0  ;;  %46 = vst.msk [vmem:[#allocation7] sm:$0xff] %vm45_vm0, %v285_v1  ;;  %189 = vmatprep.mubr.msk.f32.mxu0 %vm286_vm1, %v285_v1  ;;  %v48_v2 = vld [vmem:[#allocation5] sm:$0xff]  ;;  %v49_v3 = vld [vmem:[#allocation5 + $0x8] sm:$0xff]  ;;  %vm194_vm2 = vmpackc.low %vm45_vm0, %vm45_vm0  ;;  %s287_s11 = smov [#allocation7]  }
  0x28   :  { %v193_v4 = vpack.c.bf16 %v49_v3, %v48_v2  ;;  %v50_v5 = vld [vmem:[#allocation5 + $0x10] sm:$0xff]  ;;  %v51_v6 = vld [vmem:[#allocation5 + $0x18] sm:$0xff]  ;;  %s160_s12 = sshll.u32 %s287_s11, 4  ;;  %s161_s12 = int_to_ptr.vmem [resolvable:$true] %s160_s12 }
  0x29   :  { %v197_v7 = vpack.c.bf16 %v51_v6, %v50_v5  ;;  %v47_v8 = vld [vmem:[#allocation2] sm:$0xff]  ;;  %s252_s13 = scalar_lea.vmem %s161_s12, 128  ;;  %p257_p3 = scmp.lt.s32.totalorder %s161_s12, %s161_s12 }
  0x2a   :  { %195 = vmatpush3.bf16.xpose.msk.msra.mxu0 %vm194_vm2, %v193_v4  ;;  %v175_v13 = vld [vmem:[%s362_s2] ss:$0 sm:$0xff]  ;;  %p253_p2 = scmp.ne.s32.totalorder %s161_s12, %s252_s13  ;;  %p258_p4 = scmp.lt.s32.totalorder %s252_s13, %s252_s13 }
  0x2b   :  { %196 = vmatprep.subr.bf16.mxu0 %v284_v0 }
  0x2c   :  { %p259_p5 = por %p258_p4, %p257_p3 }
  0x2e   :  { %v52_v9 = vld [vmem:[#allocation7] sm:$0xff]  ;;  %p260_p6 = pnand %p259_p5, %p253_p2 }
  0x32   :  { %199 = vmatpush3.bf16.xpose.msk.msra.mxu0 %vm194_vm2, %v197_v7 }
  0x39   :  { %190 = vmatmul.mubr.msk.f32.vlgmr.msra.gmra.mrb[0].mxu0 %vm45_vm0, %v47_v8 }
 0x10c   :  { %v135_v10 = vpop.f32.mrb[0].mxu0 }
 0x10d   :  { %v139_v11 = vadd.f32 %v135_v10, %v52_v9  ;;  %v191_v12 = vpop.f32.mrb[1].mxu0 }
 0x10f   :  { %140 = vst.msk [vmem:[#allocation7] sm:$0xff] %vm45_vm0, %v139_v11 }
 0x116   :  { %v144_v14 = vld [vmem:[#allocation7] sm:$0xff] }
 0x117   :  { %v152_v15 = vadd.f32 %v175_v13, %v144_v14 }
 0x119   :  { %153 = vst.msk [vmem:[#allocation7] sm:$0xff] %vm45_vm0, %v152_v15 }
 0x11a   :  { %263 = shalt.err (!%p260_p6)
}
 0x11b   :  { %s264_s16 = scalar_lea.hbm %s363_s3, 128 }
 0x11c   :  { %p265_p7 = scmp.ne.s32.totalorder %s363_s3, %s264_s16  ;;  %p268_p8 = scmp.lt.u32.totalorder %s264_s16, %s363_s3 }
 0x11e   :  { %p270_p9 = pnand %p268_p8, %p265_p7 }
 0x120   :  { %273 = shalt.err (!%p270_p9)
}
 0x121   :  { %163 = dma.vmem_to_hbm [thread:$0]  %s161_s12, 128, %s363_s3, [#allocation4]  }
 0x122   :  { %278 = dma.done.wait [#allocation4], 128  }
 0x123   :  { %279 = vsyncadd [#allocation4], 4294967168 }
 0x124   :  { %167 = vsyncpa [#allocation3], 1 }
 0x125   :  { %168 = vsyncpa [#allocation6], 1 }
 0x126   :  { %169 = vsyncpa [#allocation4], 1 }

</bundles_post_ra>
